<compile_context>
chip_gen: v5e
topology: v5e:2x2
jax: 0.10.0
libtpu: 0.0.40
codegen_flags: <defaults>
</compile_context>

<pallas_src>
import functools

import jax
import jax.numpy as jnp
from jax.experimental import pallas as pl
from jax.experimental.pallas import tpu as pltpu


def _round_up(x, m):
    return ((x + m - 1) // m) * m


def _cdiv(a, b):
    return (a + b - 1) // b


def _vmem_budgets():
    """(double-buffered-input budget, vmem_limit_bytes), per TPU generation."""
    cap = None
    try:
        info = pltpu.get_tpu_info()
        cap = int(getattr(info, "vmem_capacity_bytes", 0)) or None
    except Exception:
        cap = None
    if cap is None:
        cap = 64 * 1024 * 1024            # unknown -> assume v7x-sized VMEM
    if cap >= 96 * 1024 * 1024:           # v5e / v6e: 128 MiB physical VMEM
        return 48 * 1024 * 1024, 80 * 1024 * 1024
    # v7x: 64 MiB per TensorCore -> keep double-buffered inputs <= ~24 MiB
    return 24 * 1024 * 1024, 44 * 1024 * 1024


# --------------------------------------------------------------------------
# Kernels
# --------------------------------------------------------------------------

def _dice_packed_kernel(pred_ref, targ_ref, mask_ref, num_ref, den_ref, *,
                        p, tr, chunk_rows, r_total, need_tail, unroll):
    """One (tr, 128) sublane-packed block of one batch row -> (chunk_rows,128)."""
    j = pl.program_id(1)
    row0 = j * tr   # global sublane-row offset of this block

    def body(c, accs):
        acc_num, acc_den = accs
        lo = pl.multiple_of(c * chunk_rows, 8)
        pr = pred_ref[pl.ds(lo, chunk_rows), :].astype(jnp.float32)
        tg = targ_ref[pl.ds(lo, chunk_rows), :].astype(jnp.float32)
        vm = mask_ref[pl.ds(lo, chunk_rows), :].astype(jnp.float32)
        if p == 2:
            pw = pr * pr + tg * tg
        elif p == 1:
            pw = pr + tg
        else:
            pw = pr ** p + tg ** p
        num_t = pr * tg * vm
        den_t = pw * vm
        if need_tail:
            # Mask AFTER the products: the OOB tail of the last block is
            # garbage (possibly NaN/Inf) and must be discarded by a select.
            rid = jax.lax.broadcasted_iota(jnp.int32, (chunk_rows, 128), 0)
            valid = (rid + (row0 + lo)) < r_total
            num_t = jnp.where(valid, num_t, 0.0)
            den_t = jnp.where(valid, den_t, 0.0)
        # Chunk-wide accumulators: one wide independent VPU add per chunk.
        return acc_num + num_t, acc_den + den_t

    acc0 = (jnp.zeros((chunk_rows, 128), jnp.float32),
            jnp.zeros((chunk_rows, 128), jnp.float32))
    acc_num, acc_den = jax.lax.fori_loop(0, tr // chunk_rows, body, acc0,
                                         unroll=unroll)
    num_ref[...] = acc_num
    den_ref[...] = acc_den


def _dice_rows_kernel(pred_ref, targ_ref, mask_ref, num_ref, den_ref, *,
                      p, tile_l, chunk, l_total, need_tail, unroll):
    """One (N, tile_l) lane block (ragged-L fallback) -> (N, 128) partials."""
    i = pl.program_id(0)
    nrows = pred_ref.shape[0]
    col0 = i * tile_l

    def body(c, accs):
        acc_num, acc_den = accs
        lo = pl.multiple_of(c * chunk, 128)
        pr = pred_ref[:, pl.ds(lo, chunk)].astype(jnp.float32)
        tg = targ_ref[:, pl.ds(lo, chunk)].astype(jnp.float32)
        vm = mask_ref[:, pl.ds(lo, chunk)].astype(jnp.float32)
        if p == 2:
            pw = pr * pr + tg * tg
        elif p == 1:
            pw = pr + tg
        else:
            pw = pr ** p + tg ** p
        num_t = pr * tg * vm
        den_t = pw * vm
        if need_tail:
            lane = jax.lax.broadcasted_iota(jnp.int32, (nrows, chunk), 1)
            valid = (lane + (col0 + lo)) < l_total
            num_t = jnp.where(valid, num_t, 0.0)
            den_t = jnp.where(valid, den_t, 0.0)
        # Fold into lane-wide accumulators with static 128-lane slices
        # (pure VPU adds, <= 8 per chunk; kernel is HBM-bound anyway).
        for k in range(chunk // 128):
            s = slice(k * 128, (k + 1) * 128)
            acc_num = acc_num + num_t[:, s]
            acc_den = acc_den + den_t[:, s]
        return acc_num, acc_den

    acc0 = (jnp.zeros((nrows, 128), jnp.float32),
            jnp.zeros((nrows, 128), jnp.float32))
    acc_num, acc_den = jax.lax.fori_loop(0, tile_l // chunk, body, acc0,
                                         unroll=unroll)
    num_ref[...] = acc_num
    den_ref[...] = acc_den


# --------------------------------------------------------------------------
# Wrapper
# --------------------------------------------------------------------------

def binary_dice_loss(predict, target, valid_mask, *, smooth=1.0, p=2,
                     reduction="mean"):
    assert predict.shape[0] == target.shape[0], \
        "predict & target batch size don't match"
    n = predict.shape[0]

    def _flat(x):
        x = x.reshape(n, -1)
        if x.dtype == jnp.bool_:
            # 1-byte mask straight into the kernel (never widen to bf16:
            # that would add an HBM pass and double the mask read traffic).
            x = x.astype(jnp.int8)
        return x

    pred2d, targ2d, mask2d = _flat(predict), _flat(target), _flat(valid_mask)
    l = pred2d.shape[1]
    assert targ2d.shape[1] == l and mask2d.shape[1] == l
    inputs2d = (pred2d, targ2d, mask2d)
    bytes_sum = sum(x.dtype.itemsize for x in inputs2d)
    in_bytes = sum(x.size * x.dtype.itemsize for x in inputs2d)

    in_budget, vmem_limit = _vmem_budgets()
    flops = 7 * n * l
    transcendentals = 0 if p in (1, 2) else 2 * n * l

    if l % 128 == 0:
        # ------- packed path: [N, R, 128]; reduction axis fills sublanes ----
        r = l // 128
        r8 = _round_up(r, 8)
        tr_budget = max(8, (in_budget // (2 * 128 * bytes_sum)) // 8 * 8)
        tr = max(8, min(tr_budget, r8))
        if n == 1 and r8 > 8:
            # single-row batch: keep >= 2 row-blocks so v7x's 2 TCs get work.
            tr = max(8, min(tr, _round_up(_cdiv(r8, 2), 8)))
        chunk_rows = 32 if tr % 32 == 0 else (16 if tr % 16 == 0 else 8)
        blocks = _cdiv(r, tr)
        need_tail = (r % tr) != 0
        n_chunks = tr // chunk_rows
        unroll = 2 if n_chunks >= 2 else 1

        pred3 = pred2d.reshape(n, r, 128)   # free metadata reshapes
        targ3 = targ2d.reshape(n, r, 128)
        mask3 = mask2d.reshape(n, r, 128)

        kernel = functools.partial(
            _dice_packed_kernel, p=p, tr=tr, chunk_rows=chunk_rows,
            r_total=r, need_tail=need_tail, unroll=unroll)

        in_spec = pl.BlockSpec((None, tr, 128), lambda b, j: (b, j, 0))
        out_spec = pl.BlockSpec((None, None, chunk_rows, 128),
                                lambda b, j: (b, j, 0, 0))
        out_sds = jax.ShapeDtypeStruct((n, blocks, chunk_rows, 128),
                                       jnp.float32)

        num_parts, den_parts = pl.pallas_call(
            kernel,
            out_shape=(out_sds, out_sds),
            grid_spec=pltpu.PrefetchScalarGridSpec(
                num_scalar_prefetch=0,
                grid=(n, blocks),
                in_specs=[in_spec, in_spec, in_spec],
                out_specs=[out_spec, out_spec],
            ),
            compiler_params=pltpu.CompilerParams(
                dimension_semantics=("parallel", "parallel"),
                vmem_limit_bytes=vmem_limit,
            ),
            cost_estimate=pl.CostEstimate(
                flops=flops, transcendentals=transcendentals,
                bytes_accessed=in_bytes
                + 2 * n * blocks * chunk_rows * 128 * 4),
        )(pred3, targ3, mask3)

        num = num_parts.sum(axis=(1, 2, 3))   # [N]
        den = den_parts.sum(axis=(1, 2, 3))   # [N]
    else:
        # ------- rows path: ragged L, no wrapper-side padding ---------------
        n_pad = _round_up(n, 8)
        chunk = max(128, min(1024, ((4096 // n_pad) // 128) * 128))
        tile_budget = in_budget // (2 * n_pad * bytes_sum)
        l_ceil = _round_up(l, chunk)
        tile_l = max(chunk, min((tile_budget // chunk) * chunk, l_ceil))
        if l_ceil > chunk:
            # keep >= 2 blocks so the pipeline overlaps and v7x can shard.
            tile_l = max(chunk, min(tile_l, _round_up(_cdiv(l_ceil, 2), chunk)))
        blocks = _cdiv(l, tile_l)
        need_tail = (l % tile_l) != 0
        n_chunks = tile_l // chunk
        unroll = 2 if n_chunks >= 2 else 1

        kernel = functools.partial(
            _dice_rows_kernel, p=p, tile_l=tile_l, chunk=chunk,
            l_total=l, need_tail=need_tail, unroll=unroll)

        in_spec = pl.BlockSpec((n, tile_l), lambda i: (0, i))
        out_spec = pl.BlockSpec((None, n, 128), lambda i: (i, 0, 0))
        out_sds = jax.ShapeDtypeStruct((blocks, n, 128), jnp.float32)

        num_parts, den_parts = pl.pallas_call(
            kernel,
            out_shape=(out_sds, out_sds),
            grid_spec=pltpu.PrefetchScalarGridSpec(
                num_scalar_prefetch=0,
                grid=(blocks,),
                in_specs=[in_spec, in_spec, in_spec],
                out_specs=[out_spec, out_spec],
            ),
            compiler_params=pltpu.CompilerParams(
                dimension_semantics=("parallel",),
                vmem_limit_bytes=vmem_limit,
            ),
            cost_estimate=pl.CostEstimate(
                flops=flops, transcendentals=transcendentals,
                bytes_accessed=in_bytes + 2 * blocks * n * 128 * 4),
        )(pred2d, targ2d, mask2d)

        num = num_parts.sum(axis=(0, 2))   # [N]
        den = den_parts.sum(axis=(0, 2))   # [N]

    # Tiny final dice formula in plain JAX.
    num = num * 2.0 + smooth
    den = den + smooth
    loss = 1.0 - num / den

    if reduction == "mean":
        return jnp.mean(loss)
    elif reduction == "sum":
        return jnp.sum(loss)
    elif reduction == "none":
        return loss
    else:
        raise Exception("Unexpected reduction {}".format(reduction))


# --------------------------------------------------------------------------
# Reference + self-test
# --------------------------------------------------------------------------

def _reference(predict, target, valid_mask, smooth=1.0, p=2, reduction="mean"):
    n = predict.shape[0]
    pr = predict.reshape(n, -1).astype(jnp.float32)
    tg = target.reshape(n, -1).astype(jnp.float32)
    vm = valid_mask.reshape(n, -1).astype(jnp.float32)
    num = jnp.sum(pr * tg * vm, axis=1) * 2 + smooth
    den = jnp.sum((pr ** p + tg ** p) * vm, axis=1) + smooth
    loss = 1 - num / den
    if reduction == "mean":
        return loss.mean()
    if reduction == "sum":
        return loss.sum()
    return loss


if __name__ == "__main__":
    key = jax.random.PRNGKey(0)
    k1, k2, k3, k4, k5, k6 = jax.random.split(key, 6)

    # Test 1: typical NCHW use, L = C*H*W = 1024 (lane-aligned -> packed path).
    N, C, H, W = 2, 4, 16, 16
    predict = jax.nn.sigmoid(jax.random.normal(k1, (N, C, H, W), jnp.float32))
    target = (jax.random.uniform(k2, (N, C, H, W)) > 0.5).astype(jnp.float32)
    valid_mask = (jax.random.uniform(k3, (N, C, H, W)) > 0.1).astype(jnp.float32)

    out_mean = jax.block_until_ready(
        binary_dice_loss(predict, target, valid_mask, smooth=1.0, p=2,
                         reduction="mean"))
    ref_mean = _reference(predict, target, valid_mask, 1.0, 2, "mean")
    assert jnp.allclose(out_mean, ref_mean, rtol=1e-5, atol=1e-5), (out_mean, ref_mean)

    out_none = jax.block_until_ready(
        binary_dice_loss(predict, target, valid_mask, smooth=1.0, p=2,
                         reduction="none"))
    ref_none = _reference(predict, target, valid_mask, 1.0, 2, "none")
    assert jnp.allclose(out_none, ref_none, rtol=1e-5, atol=1e-5), (out_none, ref_none)

    # Test 2: ragged L (9409 = 97*97, not lane-aligned -> rows path with
    # in-kernel tail masking, no wrapper pad) plus a bf16 predict input.
    N2, C2, H2, W2 = 2, 1, 97, 97
    predict2 = jax.nn.sigmoid(
        jax.random.normal(k4, (N2, C2, H2, W2), jnp.float32)).astype(jnp.bfloat16)
    target2 = (jax.random.uniform(k5, (N2, C2, H2, W2)) > 0.5).astype(jnp.float32)
    mask2 = (jax.random.uniform(k6, (N2, C2, H2, W2)) > 0.1).astype(jnp.float32)

    out2 = jax.block_until_ready(
        binary_dice_loss(predict2, target2, mask2, smooth=1.0, p=2,
                         reduction="sum"))
    ref2 = _reference(predict2.astype(jnp.float32), target2, mask2, 1.0, 2, "sum")
    assert jnp.allclose(out2, ref2, rtol=1e-4, atol=1e-4), (out2, ref2)

    print("KERNEL_OK")
</pallas_src>

<mosaic_0001>
module attributes {stable_mosaic.version = 11 : i64} {
  func.func @_dice_packed_kernel(%arg0: i32, %arg1: i32, %arg2: memref<1x8x128xf32, #tpu.memory_space<vmem>>, %arg3: memref<1x8x128xf32, #tpu.memory_space<vmem>>, %arg4: memref<1x8x128xf32, #tpu.memory_space<vmem>>, %arg5: memref<1x1x8x128xf32, #tpu.memory_space<vmem>>, %arg6: memref<1x1x8x128xf32, #tpu.memory_space<vmem>>) attributes {dimension_semantics = [#tpu.dimension_semantics<parallel>, #tpu.dimension_semantics<parallel>], iteration_bounds = array<i64: 2, 1>, scalar_prefetch = 0 : i64, scratch_operands = 0 : i64, tpu.core_type = #tpu.core_type<tc>, window_params = [{transform_indices = @transform_0, window_bounds = array<i64: 1, 8, 128>}, {transform_indices = @transform_1, window_bounds = array<i64: 1, 8, 128>}, {transform_indices = @transform_2, window_bounds = array<i64: 1, 8, 128>}, {transform_indices = @transform_3, window_bounds = array<i64: 1, 1, 8, 128>}, {transform_indices = @transform_4, window_bounds = array<i64: 1, 1, 8, 128>}]} {
    %cst = arith.constant 0.000000e+00 : f32
    %0 = vector.broadcast %cst : f32 to vector<8x128xf32>
    %cst_0 = arith.constant 0.000000e+00 : f32
    %1 = vector.broadcast %cst_0 : f32 to vector<8x128xf32>
    %c0_i32 = arith.constant 0 : i32
    %c8_i32 = arith.constant 8 : i32
    %2 = arith.muli %c0_i32, %c8_i32 : i32
    %3 = tpu.assume_multiple %2, 8 : i32
    %c0 = arith.constant 0 : index
    %4 = arith.index_cast %3 : i32 to index
    %c0_1 = arith.constant 0 : index
    %5 = vector.load %arg2[%c0, %4, %c0_1] : memref<1x8x128xf32, #tpu.memory_space<vmem>>, vector<1x8x128xf32>
    %6 = vector.shape_cast %5 : vector<1x8x128xf32> to vector<8x128xf32>
    %c0_2 = arith.constant 0 : index
    %7 = arith.index_cast %3 : i32 to index
    %c0_3 = arith.constant 0 : index
    %8 = vector.load %arg3[%c0_2, %7, %c0_3] : memref<1x8x128xf32, #tpu.memory_space<vmem>>, vector<1x8x128xf32>
    %9 = vector.shape_cast %8 : vector<1x8x128xf32> to vector<8x128xf32>
    %c0_4 = arith.constant 0 : index
    %10 = arith.index_cast %3 : i32 to index
    %c0_5 = arith.constant 0 : index
    %11 = vector.load %arg4[%c0_4, %10, %c0_5] : memref<1x8x128xf32, #tpu.memory_space<vmem>>, vector<1x8x128xf32>
    %12 = vector.shape_cast %11 : vector<1x8x128xf32> to vector<8x128xf32>
    %13 = arith.mulf %6, %6 : vector<8x128xf32>
    %14 = arith.mulf %9, %9 : vector<8x128xf32>
    %15 = arith.addf %13, %14 : vector<8x128xf32>
    %16 = arith.mulf %6, %9 : vector<8x128xf32>
    %17 = arith.mulf %16, %12 : vector<8x128xf32>
    %18 = arith.mulf %15, %12 : vector<8x128xf32>
    %19 = arith.addf %0, %17 : vector<8x128xf32>
    %20 = arith.addf %1, %18 : vector<8x128xf32>
    %c1_i32 = arith.constant 1 : i32
    %c0_6 = arith.constant 0 : index
    %c0_7 = arith.constant 0 : index
    %c0_8 = arith.constant 0 : index
    %c0_9 = arith.constant 0 : index
    %21 = vector.load %arg5[%c0_6, %c0_7, %c0_8, %c0_9] : memref<1x1x8x128xf32, #tpu.memory_space<vmem>>, vector<1x1x8x128xf32>
    %22 = vector.shape_cast %21 : vector<1x1x8x128xf32> to vector<8x128xf32>
    %23 = vector.shape_cast %19 : vector<8x128xf32> to vector<1x1x8x128xf32>
    tpu.vector_store %arg5[%c0_6, %c0_7, %c0_8, %c0_9], %23 {strides = array<i32>} : memref<1x1x8x128xf32, #tpu.memory_space<vmem>>, vector<1x1x8x128xf32>,
    %c0_10 = arith.constant 0 : index
    %c0_11 = arith.constant 0 : index
    %c0_12 = arith.constant 0 : index
    %c0_13 = arith.constant 0 : index
    %24 = vector.load %arg6[%c0_10, %c0_11, %c0_12, %c0_13] : memref<1x1x8x128xf32, #tpu.memory_space<vmem>>, vector<1x1x8x128xf32>
    %25 = vector.shape_cast %24 : vector<1x1x8x128xf32> to vector<8x128xf32>
    %26 = vector.shape_cast %20 : vector<8x128xf32> to vector<1x1x8x128xf32>
    tpu.vector_store %arg6[%c0_10, %c0_11, %c0_12, %c0_13], %26 {strides = array<i32>} : memref<1x1x8x128xf32, #tpu.memory_space<vmem>>, vector<1x1x8x128xf32>,
    return
  }
  func.func @transform_0(%arg0: i32, %arg1: i32) -> (i32, i32, i32) {
    %c0_i32 = arith.constant 0 : i32
    %c0_i32_0 = arith.constant 0 : i32
    return %arg0, %arg1, %c0_i32 : i32, i32, i32
  }
  func.func @transform_1(%arg0: i32, %arg1: i32) -> (i32, i32, i32) {
    %c0_i32 = arith.constant 0 : i32
    %c0_i32_0 = arith.constant 0 : i32
    return %arg0, %arg1, %c0_i32 : i32, i32, i32
  }
  func.func @transform_2(%arg0: i32, %arg1: i32) -> (i32, i32, i32) {
    %c0_i32 = arith.constant 0 : i32
    %c0_i32_0 = arith.constant 0 : i32
    return %arg0, %arg1, %c0_i32 : i32, i32, i32
  }
  func.func @transform_3(%arg0: i32, %arg1: i32) -> (i32, i32, i32, i32) {
    %c0_i32 = arith.constant 0 : i32
    %c0_i32_0 = arith.constant 0 : i32
    %c0_i32_1 = arith.constant 0 : i32
    return %arg0, %arg1, %c0_i32, %c0_i32_0 : i32, i32, i32, i32
  }
  func.func @transform_4(%arg0: i32, %arg1: i32) -> (i32, i32, i32, i32) {
    %c0_i32 = arith.constant 0 : i32
    %c0_i32_0 = arith.constant 0 : i32
    %c0_i32_1 = arith.constant 0 : i32
    return %arg0, %arg1, %c0_i32, %c0_i32_0 : i32, i32, i32, i32
  }
}

</mosaic_0001>

<bundles_post_ra>
// kernel: tpu_custom_call.1
= control target key start
LH: loop header
LB: loop body
LE: loop exit
PB: predicated region body
PF: predicated region fallthrough
CT: control target
= control target key end

     0   :  { %s1054_s0 = inlined_call_operand.hbm [shape: f32[2,8,128], index: 0, kind: input, shape index: {}]   ;;  %s1055_s1 = inlined_call_operand.hbm [shape: f32[2,8,128], index: 1, kind: input, shape index: {}]   ;;  %s1056_s2 = inlined_call_operand.hbm [shape: f32[2,8,128], index: 2, kind: input, shape index: {}]   ;;  %s1057_s3 = inlined_call_operand.hbm [shape: f32[2,1,8,128], index: 3, kind: output, shape index: {0}]   ;;  %s1058_s4 = inlined_call_operand.hbm [shape: f32[2,1,8,128], index: 4, kind: output, shape index: {1}]  }
   0x1   :  { %1062 = sst [smem:[#allocation19_spill]] %s1055_s1 }
   0x2   :  { %10 = vsyncpa [#allocation3], 0 }
   0x3   :  { %12 = vsyncpa [#allocation3 + $0x1], 0 }
   0x4   :  { %13 = vsyncpa [#allocation6], 0 }
   0x5   :  { %15 = vsyncpa [#allocation6 + $0x1], 0 }
   0x6   :  { %16 = vsyncpa [#allocation4], 0 }
   0x7   :  { %18 = vsyncpa [#allocation4 + $0x1], 0 }
   0x8   :  { %19 = vsyncpa [#allocation10], 0 }
   0x9   :  { %21 = vsyncpa [#allocation10 + $0x1], 0  ;;  %s869_s15 = smov 0   ;;  %s871_s16 = smov 0  }
   0xa   :  { %s873_s17 = smov 0   ;;  %s875_s18 = smov 0  }
   0xb   :  { %s877_s19 = smov 0   ;;  %s879_s20 = smov 0  }
   0xc LB: > { %1063 = sst [smem:[#allocation15_spill]] %s830_s17  ;;  %s900_s21 = sadd.s32 4294967295, %s842_s20   ;;  %s842_s20 = sphi %s879_s20, %s27_s20   ;;  %s838_s19 = sphi %s877_s19, %s1077_s19   ;;  %s834_s18 = sphi %s875_s18, %s1076_s18   ;;  %s830_s17 = sphi %s873_s17, %s1075_s17   ;;  %s826_s16 = sphi %s871_s16, %s1079_s16   ;;  %s822_s15 = sphi %s869_s15, %s1078_s15  }
   0xd   : > { %1064 = sst [smem:[#allocation16_spill]] %s838_s19  ;;  %s536_s22 = sadd.s32 4294967294, %s842_s20  }
   0xe   : > { %s39_s23 = sadd.s32 1, %s838_s19  ;;  %s48_s24 = sadd.s32 1, %s830_s17 }
   0xf   : > { %p41_p0 = scmp.ge.s32.totalorder %s39_s23, 2  ;;  %p55_p1 = scmp.ne.s32.totalorder %s830_s17, %s826_s16 }
  0x10   : > { %p56_p2 = scmp.eq.s32.totalorder %s842_s20, 0  ;;  %p61_p3 = scmp.ne.s32.totalorder %s826_s16, %s822_s15 }
  0x11   : > { %s1081_s23 = smov (%p41_p0, %s39_s23), 0  ;;  %p62_p5 = scmp.eq.s32.totalorder %s900_s21, 0 }
  0x12   : > { %1065 = sst [smem:[#allocation17_spill]] %s1081_s23  ;;  %p912_p4 = por %p56_p2, %p55_p1 }
  0x13   : > { %s43_s26 = ssub.s32 %s838_s19, %s1081_s23  ;;  %p143_p6 = scmp.eq.s32.totalorder %s900_s21, 1 }
  0x14   : > { %p46_p7 = scmp.eq.s32.totalorder %s43_s26, 0  ;;  %p920_p8 = por %p62_p5, %p61_p3 }
  0x15   : > { %p924_p9 = por %p143_p6, %p55_p1  ;;  %p149_p10 = scmp.eq.s32.totalorder %s536_s22, 1 }
  0x16   : > { %s929_s29 = scalar_select %p46_p7, %s830_s17, %s48_s24  }
  0x17   : > { %p931_p11 = por %p149_p10, %p61_p3  ;;  %p538_p12 = scmp.ge.s32.totalorder %s842_s20, 2 }
  0x18   : > { %1069 = sst [smem:[#allocation18_spill]] %s929_s29  ;;  %p584_p13 = scmp.lt.s32.totalorder %s842_s20, 2 }
  0x19   : > { %s197_s5 = sand.u32 1, %s830_s17   ;;  %s540_s7 = sshll.u32 %s838_s19, 3 }
  0x1a   : > { %s539_s6 = sshll.u32 %s197_s5, 3  ;;  %p941_p0 = pnand %p584_p13, %p912_p4 }
  0x1b   : > { %s217_s9 = sand.u32 1, %s842_s20   ;;  %s1072_s1 = sld [smem:[#allocation19_spill]] }
  0x1c   : > { %s221_s14 = scalar_lea.vmem [#allocation5], %s539_s6  ;;  %s218_s24 = scalar_lea.sflag [#allocation6], %s217_s9 }
  0x1d   : > { %s230_s22 = sshll.u32 %s221_s14, 4  ;;  %p545_p1 = scmp.ge.s32.totalorder %s842_s20, 1  ;;  %s231_s22 = int_to_ptr.vmem [resolvable:$true] %s230_s22 }
  0x1e   : > { %p255_p2 = scmp.lt.s32.totalorder %s842_s20, 3  ;;  %s206_s10 = scalar_lea.hbm %s1054_s0, %s540_s7 }
  0x1f   : > { %s208_s11 = sshll.u32 %s206_s10, 4  ;;  %s198_s14 = scalar_lea.sflag [#allocation3], %s197_s5  ;;  %s209_s11 = int_to_ptr.hbm [resolvable:$true] %s208_s11 }
  0x20   : > { %p953_p3 = pnand %p545_p1, %p255_p2  ;;  %s241_s29 = scalar_lea.vmem [#allocation7], %s539_s6 }
  0x21   : > { %s226_s12 = scalar_lea.hbm %s1072_s1, %s540_s7  ;;  %s250_s17 = sshll.u32 %s241_s29, 4  ;;  %s251_s17 = int_to_ptr.vmem [resolvable:$true] %s250_s17 }
  0x22   : > { %s228_s13 = sshll.u32 %s226_s12, 4  ;;  %s201_s12 = scalar_lea.vmem [#allocation2], %s539_s6  ;;  %s229_s13 = int_to_ptr.hbm [resolvable:$true] %s228_s13 }
  0x23   : > { %573 = dma.hbm_to_vmem [thread:$0]  (!%p941_p0), %s229_s13, 128, %s231_s22, %s218_s24  }
  0x24   : > { %s210_s1 = sshll.u32 %s201_s12, 4  ;;  %s246_s22 = scalar_lea.hbm %s1056_s2, %s540_s7  ;;  %s211_s1 = int_to_ptr.vmem [resolvable:$true] %s210_s1 }
  0x25   : > { %570 = dma.hbm_to_vmem [thread:$0]  (!%p941_p0), %s209_s11, 128, %s211_s1, %s198_s14  }
  0x26   : > { %s248_s19 = sshll.u32 %s246_s22, 4  ;;  %259 = sbr.rel (%p953_p3) target bundleno = 76 (0x4c), region = 32  ;;  %s249_s19 = int_to_ptr.hbm [resolvable:$true] %s248_s19 }
  0x27   : > { %576 = dma.hbm_to_vmem [thread:$0]  (!%p941_p0), %s249_s19, 128, %s251_s17, %s218_s24  }
  0x28   : > { %s970_s23 = sand.u32 (!%p953_p3), 1, %s826_s16  }
  0x29   : > { %s973_s1 = sshll.u32 (!%p953_p3), %s970_s23, 3  ;;  %s262_s5 = scalar_lea.sflag (!%p953_p3), [#allocation3], %s970_s23 }
  0x2a   : > { %s265_s7 = scalar_lea.vmem (!%p953_p3), [#allocation2], %s973_s1 }
  0x2b   : > { %805 = dma.done.wait (%p920_p8), %s262_s5, 128  }
  0x2c   : > { %807 = vsyncadd (%p920_p8), %s262_s5, 4294967168  ;;  %s271_s17 = sand.u32 1, %s900_s21   ;;  %s275_s29 = scalar_lea.vmem [#allocation5], %s973_s1 }
  0x2d   : > { %s272_s19 = scalar_lea.sflag [#allocation6], %s271_s17 }
  0x2e   : > { %809 = dma.done.wait (%p920_p8), %s272_s19, 256  }
  0x2f   : > { %811 = vsyncadd (%p920_p8), %s272_s19, 4294967040  ;;  %s553_s6 = sshll.u32 %s834_s18, 3  ;;  %s318_s26 = scalar_lea.vmem [#allocation8], %s973_s1  ;;  %v326_v0 = vld [vmem:[%s265_s7] sm:$0xff]  ;;  %v327_v1 = vld [vmem:[%s275_s29] sm:$0xff] }
  0x30   : > { %s356_s25 = scalar_lea.hbm %s1057_s3, %s553_s6  ;;  %s992_s10 = sshll.u32 %s318_s26, 4  ;;  %v332_v3 = vmul.f32 %v327_v1, %v326_v0  ;;  %v329_v4 = vmul.f32 %v326_v0, %v326_v0  ;;  %v330_v5 = vmul.f32 %v327_v1, %v327_v1  ;;  %s359_s10 = int_to_ptr.vmem [resolvable:$true] %s992_s10 }
  0x31   : > { %s371_s12 = scalar_lea.hbm %s1058_s4, %s553_s6  ;;  %s285_s27 = scalar_lea.vmem [#allocation7], %s973_s1 }
  0x32   : > { %v328_v2 = vld [vmem:[%s285_s27] sm:$0xff]  ;;  %s360_s14 = sshll.u32 %s356_s25, 4  ;;  %s325_s18 = scalar_lea.vmem [#allocation9], %s973_s1  ;;  %v331_v7 = vadd.f32 %v330_v5, %v329_v4  ;;  %s361_s14 = int_to_ptr.hbm [resolvable:$true] %s360_s14 }
  0x33   : > { %s999_s9 = sshll.u32 %s325_s18, 4  ;;  %s375_s13 = sshll.u32 %s371_s12, 4  ;;  %v333_v6 = vmul.f32 %v332_v3, %v328_v2  ;;  %s374_s9 = int_to_ptr.vmem [resolvable:$true] %s999_s9  ;;  %s1003_s13 = int_to_ptr.hbm [resolvable:$true] %s375_s13 }
  0x34   : > { %v334_v8 = vmul.f32 %v331_v7, %v328_v2  ;;  %s340_s22 = scalar_lea.sflag [#allocation4], %s970_s23  ;;  %s738_s5 = sshra.s32 %s361_s14, 4  ;;  %s739_s5 = int_to_ptr.hbm [resolvable:$true] %s738_s5 }
  0x35   : > { %337 = vst [vmem:[%s318_s26] sm:$0xff] %v333_v6  ;;  %s740_s7 = scalar_lea.hbm %s739_s5, 8  ;;  %s744_s19 = scalar_lea.hbm %s1057_s3, 16 }
  0x36   : > { %p741_p4 = scmp.ne.s32.totalorder %s739_s5, %s740_s7  ;;  %p745_p7 = scmp.lt.s32.totalorder %s739_s5, %s1057_s3 }
  0x37   : > { %p746_p8 = scmp.lt.s32.totalorder %s744_s19, %s740_s7 }
  0x38   : > { %p742_p5 = pnand %p741_p4, %p924_p9 }
  0x39   : > { %p747_p10 = por %p746_p8, %p745_p7 }
  0x3a   : > { %p743_p6 = pneg %p742_p5 }
  0x3c   : > { %p748_p13 = pnand %p747_p10, %p743_p6 }
  0x3e   : > { %751 = shalt.err (!%p748_p13)
}
  0x3f   : > { %563 = dma.vmem_to_hbm [thread:$0]  (%p924_p9), %s359_s10, 128, %s361_s14, %s340_s22   ;;  %338 = vst [vmem:[%s325_s18] sm:$0xff] %v334_v8 }
  0x40   : > { %s345_s8 = scalar_lea.sflag [#allocation10], %s970_s23  ;;  %s766_s24 = sshra.s32 %s1003_s13, 4  ;;  %s767_s24 = int_to_ptr.hbm [resolvable:$true] %s766_s24 }
  0x41   : > { %s768_s25 = scalar_lea.hbm %s767_s24, 8  ;;  %s772_s11 = scalar_lea.hbm %s1058_s4, 16 }
  0x42   : > { %p769_p0 = scmp.ne.s32.totalorder %s767_s24, %s768_s25  ;;  %p773_p3 = scmp.lt.s32.totalorder %s767_s24, %s1058_s4 }
  0x43   : > { %p774_p4 = scmp.lt.s32.totalorder %s772_s11, %s768_s25 }
  0x44   : > { %p770_p1 = pnand %p769_p0, %p924_p9 }
  0x45   : > { %p775_p5 = por %p774_p4, %p773_p3 }
  0x46   : > { %p771_p2 = pneg %p770_p1 }
  0x48   : > { %p776_p6 = pnand %p775_p5, %p771_p2 }
  0x4a   : > { %779 = shalt.err (!%p776_p6)
}
  0x4b   : > { %564 = dma.vmem_to_hbm [thread:$0]  (%p924_p9), %s374_s9, 128, %s1003_s13, %s345_s8  }
  0x4c PF: > { %s387_s23 = sand.u32 1, %s822_s15   ;;  %p578_p7 = pnand %p538_p12, %p931_p11 }
  0x4d   : > { %s388_s10 = scalar_lea.sflag [#allocation4], %s387_s23 }
  0x4e   : > { %p579_p8 = pneg %p578_p7 }
  0x50   : > { %813 = dma.done.wait (%p579_p8), %s388_s10, 128  }
  0x51   : > { %815 = vsyncadd (%p579_p8), %s388_s10, 4294967168  ;;  %s398_s14 = scalar_lea.sflag [#allocation10], %s387_s23 }
  0x52   : > { %817 = dma.done.wait (%p579_p8), %s398_s14, 128  }
  0x53   : > { %819 = vsyncadd (%p579_p8), %s398_s14, 4294967168  ;;  %s27_s20 = sadd.s32 1, %s842_s20   ;;  %s1074_s28 = sld [smem:[#allocation15_spill]] }
  0x54   : > { %p24_p10 = scmp.ge.s32.totalorder %s27_s20, 4   ;;  %s1075_s17 = sld [smem:[#allocation18_spill]] }
  0x55   : > { %s1076_s18 = sld [smem:[#allocation16_spill]]  ;;  %s1078_s15 = smov %s826_s16 }
  0x56   : > { %s1077_s19 = sld [smem:[#allocation17_spill]]  ;;  %26 = sbr.rel (!%p24_p10) target bundleno = 12 (0xc), region = 118 }
  0x59   : > { %s1079_s16 = smov %s1074_s28 }
  0x5b   :  { %404 = vsyncpa [#allocation3], 1 }
  0x5c   :  { %406 = vsyncpa [#allocation3 + $0x1], 1 }
  0x5d   :  { %407 = vsyncpa [#allocation6], 1 }
  0x5e   :  { %409 = vsyncpa [#allocation6 + $0x1], 1 }
  0x5f   :  { %410 = vsyncpa [#allocation4], 1 }
  0x60   :  { %412 = vsyncpa [#allocation4 + $0x1], 1 }
  0x61   :  { %413 = vsyncpa [#allocation10], 1 }
  0x62   :  { %415 = vsyncpa [#allocation10 + $0x1], 1 }

</bundles_post_ra>
